<compile_context>
chip_gen: v6e
topology: v6e:2x2x1
jax: 0.10.0
libtpu: 0.0.40
codegen_flags: <defaults>
</compile_context>

<pallas_src>
import jax
import jax.numpy as jnp
from jax.experimental import pallas as pl
from jax.experimental.pallas import tpu as pltpu


# --------------------------------- helpers ------------------------------------
def _round_up(x, m):
    return ((x + m - 1) // m) * m


def _vmem_capacity_bytes():
    """Trace-time VMEM capacity query; conservative 64 MiB fallback."""
    try:
        info = pltpu.get_tpu_info()
        cap = getattr(info, "vmem_capacity_bytes", None)
        if cap:
            return int(cap)
    except Exception:
        pass
    return 64 * 1024 * 1024


def _choose_tile(dim_padded, preferred):
    """Largest multiple of 128 that divides dim_padded and is <= preferred."""
    if preferred >= dim_padded:
        return dim_padded
    t = max(128, (preferred // 128) * 128)
    while t > 128:
        if dim_padded % t == 0:
            return t
        t -= 128
    return 128


def _tile_footprint_bytes(tm, tn, tk, in_itemsize, out_itemsize,
                          needs_scratch, in_bufs):
    f = in_bufs * (tm * tk + tk * tn) * in_itemsize + 2 * tm * tn * out_itemsize
    if needs_scratch:
        f += tm * tn * 4
    return f


def _choose_tk(Kp, tm, tn, in_itemsize, out_itemsize, needs_scratch,
               budget, in_bufs, preferred_tk):
    # Prefer the whole K (no reduction grid axis) when it fits the budget.
    if _tile_footprint_bytes(tm, tn, Kp, in_itemsize, out_itemsize,
                             False, in_bufs) <= budget:
        return Kp
    tk = _choose_tile(Kp, preferred_tk)
    while tk > 128 and _tile_footprint_bytes(
            tm, tn, tk, in_itemsize, out_itemsize, needs_scratch, in_bufs) > budget:
        tk = _choose_tile(Kp, tk - 128)
    return tk


# --------------------------------- kernels ------------------------------------
def _mm_single_block_kernel(a_ref, x_ref, o_ref):
    # One dot per invocation (used for the no-grid path and the no-reduce grid).
    o_ref[...] = jnp.dot(
        a_ref[...], x_ref[...], preferred_element_type=jnp.float32
    ).astype(o_ref.dtype)


def _mm_reduce_accum_out_kernel(a_ref, x_ref, o_ref):
    # f32 output: accumulate straight into the resident output block.
    p = jnp.dot(a_ref[...], x_ref[...], preferred_element_type=jnp.float32)

    @pl.when(pl.program_id(2) == 0)
    def _():
        o_ref[...] = p

    @pl.when(pl.program_id(2) != 0)
    def _():
        o_ref[...] += p


def _mm_reduce_scratch_kernel(a_ref, x_ref, o_ref, acc_ref):
    # Non-f32 output: accumulate in an f32 scratch, cast once at the end.
    # TODO(synk): integer inputs accumulate in f32 here (differs from exact
    # integer accumulation of torch.mm only for extreme K / magnitudes).
    p = jnp.dot(a_ref[...], x_ref[...], preferred_element_type=jnp.float32)

    @pl.when(pl.program_id(2) == 0)
    def _():
        acc_ref[...] = p

    @pl.when(pl.program_id(2) != 0)
    def _():
        acc_ref[...] += p

    @pl.when(pl.program_id(2) == pl.num_programs(2) - 1)
    def _():
        o_ref[...] = acc_ref[...].astype(o_ref.dtype)


# --------------------------------- wrapper ------------------------------------
def pallas_mm(a, x, *, tm=1024, tn=1024, tk=512, force_grid=False,
              cast_inputs_to_bf16=False, input_buffering=2,
              tile_vmem_budget_bytes=None):
    """out = a @ x via a Pallas TPU kernel (equivalent to torch.mm)."""
    M, K = a.shape
    K2, N = x.shape
    assert K == K2, "inner dimensions must match"

    out_dtype = jnp.result_type(a.dtype, x.dtype)
    if cast_inputs_to_bf16:
        # Optional: halves input HBM bytes and uses the MXU's native bf16 rate.
        a = a.astype(jnp.bfloat16)
        x = x.astype(jnp.bfloat16)
    in_itemsize = jnp.dtype(a.dtype).itemsize
    out_itemsize = jnp.dtype(out_dtype).itemsize

    vmem_cap = _vmem_capacity_bytes()
    hw_budget = int(vmem_cap * 3 // 4)        # ~48 MiB v7x, ~96 MiB v5e/v6e
    small_limit = vmem_cap // 4               # single-block fast-path threshold
    tile_budget = int(tile_vmem_budget_bytes or hw_budget)

    io_bytes = (M * K + K * N) * in_itemsize + M * N * out_itemsize
    flops = 2 * M * N * K

    # ------------------------------ small path --------------------------------
    if not force_grid and io_bytes <= small_limit:
        vmem_limit = int(min(2 * io_bytes + M * N * 4 + (4 << 20), hw_budget))
        return pl.pallas_call(
            _mm_single_block_kernel,
            out_shape=jax.ShapeDtypeStruct((M, N), out_dtype),
            in_specs=[pl.BlockSpec((M, K), lambda: (0, 0)),
                      pl.BlockSpec((K, N), lambda: (0, 0))],
            out_specs=pl.BlockSpec((M, N), lambda: (0, 0)),
            cost_estimate=pl.CostEstimate(flops=flops, transcendentals=0,
                                          bytes_accessed=io_bytes),
            compiler_params=pltpu.CompilerParams(vmem_limit_bytes=vmem_limit),
        )(a, x)

    # ------------------------------ tiled path --------------------------------
    # Pad only to 128-multiples (normally a no-op); tiles divide the padded dims
    # exactly, so no further padding / slicing overhead is introduced by tiling.
    Mp, Kp, Np = _round_up(M, 128), _round_up(K, 128), _round_up(N, 128)
    if (M, K) != (Mp, Kp):
        a = jnp.pad(a, ((0, Mp - M), (0, Kp - K)))
    if (K, N) != (Kp, Np):
        x = jnp.pad(x, ((0, Kp - K), (0, Np - N)))

    tm = _choose_tile(Mp, max(128, tm))
    tn = _choose_tile(Np, max(128, tn))

    # Keep >= 2 output tiles on the parallel axes so both v7x TensorCores work.
    if (Mp // tm) * (Np // tn) < 2:
        if Mp >= 256:
            tm = _choose_tile(Mp, Mp // 2)
        elif Np >= 256:
            tn = _choose_tile(Np, Np // 2)

    accumulate_into_out = (out_dtype == jnp.float32)
    needs_scratch = not accumulate_into_out
    in_bufs = max(2, int(input_buffering))

    tk = _choose_tk(Kp, tm, tn, in_itemsize, out_itemsize, needs_scratch,
                    tile_budget, in_bufs, max(128, tk))

    grid_m, grid_n, grid_k = Mp // tm, Np // tn, Kp // tk

    bytes_accessed = (M * K * in_itemsize * grid_n
                      + K * N * in_itemsize * grid_m
                      + M * N * out_itemsize)
    cost = pl.CostEstimate(flops=flops, transcendentals=0,
                           bytes_accessed=bytes_accessed)

    spec_kwargs = {}
    if in_bufs > 2:
        spec_kwargs = dict(pipeline_mode=pl.Buffered(in_bufs))

    if grid_k == 1:
        # Whole K fits: pure data-parallel grid, no reduction axis, no RMW.
        in_specs = [pl.BlockSpec((tm, Kp), lambda i, j: (i, 0), **spec_kwargs),
                    pl.BlockSpec((Kp, tn), lambda i, j: (0, j), **spec_kwargs)]
        out_spec = pl.BlockSpec((tm, tn), lambda i, j: (i, j))
        grid_spec = pltpu.PrefetchScalarGridSpec(
            num_scalar_prefetch=0, grid=(grid_m, grid_n),
            in_specs=in_specs, out_specs=out_spec)
        kernel = _mm_single_block_kernel
        semantics = ("parallel", "parallel")
        vmem_needed = _tile_footprint_bytes(tm, tn, Kp, in_itemsize,
                                            out_itemsize, False, in_bufs)
    else:
        in_specs = [pl.BlockSpec((tm, tk), lambda i, j, k: (i, k), **spec_kwargs),
                    pl.BlockSpec((tk, tn), lambda i, j, k: (k, j), **spec_kwargs)]
        out_spec = pl.BlockSpec((tm, tn), lambda i, j, k: (i, j))
        if accumulate_into_out:
            kernel = _mm_reduce_accum_out_kernel
            scratch = []
        else:
            kernel = _mm_reduce_scratch_kernel
            scratch = [pltpu.VMEM((tm, tn), jnp.float32)]
        grid_spec = pltpu.PrefetchScalarGridSpec(
            num_scalar_prefetch=0, grid=(grid_m, grid_n, grid_k),
            in_specs=in_specs, out_specs=out_spec, scratch_shapes=scratch)
        semantics = ("parallel", "parallel", "arbitrary")
        vmem_needed = _tile_footprint_bytes(tm, tn, tk, in_itemsize,
                                            out_itemsize, needs_scratch, in_bufs)

    vmem_limit = int(min(vmem_needed + (8 << 20), hw_budget))

    out = pl.pallas_call(
        kernel,
        out_shape=jax.ShapeDtypeStruct((Mp, Np), out_dtype),
        grid_spec=grid_spec,
        cost_estimate=cost,
        compiler_params=pltpu.CompilerParams(
            dimension_semantics=semantics,
            vmem_limit_bytes=vmem_limit),
    )(a, x)

    if (Mp, Np) != (M, N):
        out = out[:M, :N]
    return out


# ----------------------------------- test --------------------------------------
if __name__ == "__main__":
    key = jax.random.PRNGKey(0)
    k1, k2, k3, k4, k5, k6 = jax.random.split(key, 6)

    # Module-consistent small shapes: A is the stored parameter, x the input.
    M, K, N = 64, 32, 16
    A = jax.random.normal(k1, (M, K), dtype=jnp.float32)
    x = jax.random.normal(k2, (K, N), dtype=jnp.float32)
    out = jax.block_until_ready(pallas_mm(A, x))
    ref = jnp.dot(A, x)
    assert out.shape == (M, N)
    assert jnp.allclose(out, ref, atol=1e-4, rtol=1e-4), "mismatch (small path)"

    # Tiled, non-128-aligned shapes: exercises minimal 128-padding + the
    # no-reduction (grid_k == 1) pure-parallel path.
    A2 = jax.random.normal(k3, (200, 260), dtype=jnp.float32)
    x2 = jax.random.normal(k4, (260, 150), dtype=jnp.float32)
    out2 = jax.block_until_ready(pallas_mm(A2, x2, force_grid=True))
    assert out2.shape == (200, 150)
    assert jnp.allclose(out2, jnp.dot(A2, x2), atol=1e-3, rtol=1e-3), \
        "mismatch (tiled no-reduce path)"

    # Tiled with a K-reduction grid axis, forced via a small tile VMEM budget.
    A3 = jax.random.normal(k5, (512, 1024), dtype=jnp.float32)
    x3 = jax.random.normal(k6, (1024, 384), dtype=jnp.float32)
    out3 = jax.block_until_ready(
        pallas_mm(A3, x3, force_grid=True, tile_vmem_budget_bytes=4 << 20))
    assert out3.shape == (512, 384)
    assert jnp.allclose(out3, jnp.dot(A3, x3), atol=1e-3, rtol=1e-3), \
        "mismatch (tiled reduce path)"

    print("KERNEL_OK")
</pallas_src>

<mosaic_0001>
module attributes {stable_mosaic.version = 11 : i64} {
  func.func @_mm_single_block_kernel(%arg0: memref<64x32xf32, #tpu.memory_space<vmem>>, %arg1: memref<32x16xf32, #tpu.memory_space<vmem>>, %arg2: memref<64x16xf32, #tpu.memory_space<vmem>>) attributes {dimension_semantics = [], scalar_prefetch = 0 : i64, scratch_operands = 0 : i64, tpu.core_type = #tpu.core_type<tc>} {
    %c0 = arith.constant 0 : index
    %c0_0 = arith.constant 0 : index
    %0 = vector.load %arg0[%c0, %c0_0] : memref<64x32xf32, #tpu.memory_space<vmem>>, vector<64x32xf32>
    %c0_1 = arith.constant 0 : index
    %c0_2 = arith.constant 0 : index
    %1 = vector.load %arg1[%c0_1, %c0_2] : memref<32x16xf32, #tpu.memory_space<vmem>>, vector<32x16xf32>
    %cst = arith.constant dense<0.000000e+00> : vector<64x16xf32>
    %2 = tpu.matmul %0, %1, %cst {dimension_numbers = #tpu.dot_dimension_numbers<[1], [0], [0], [1], [0, 0, 1, 1], [], []>} : vector<64x32xf32>, vector<32x16xf32>, vector<64x16xf32> -> vector<64x16xf32>
    %c0_3 = arith.constant 0 : index
    %c0_4 = arith.constant 0 : index
    %3 = vector.load %arg2[%c0_3, %c0_4] : memref<64x16xf32, #tpu.memory_space<vmem>>, vector<64x16xf32>
    tpu.vector_store %arg2[%c0_3, %c0_4], %2 {strides = array<i32>} : memref<64x16xf32, #tpu.memory_space<vmem>>, vector<64x16xf32>,
    return
  }
}

</mosaic_0001>

<bundles_post_ra>
// kernel: tpu_custom_call.1
= control target key start
LH: loop header
LB: loop body
LE: loop exit
PB: predicated region body
PF: predicated region fallthrough
CT: control target
= control target key end

     0   :  { %vm23_vm0 = vcmask 261120   ;;  %vm153_vm1 = vcmask 130048   ;;  %s305_s1 = inlined_call_operand.vmem [shape: f32[32,16], index: 1, kind: input, shape index: {}]   ;;  %s306_s0 = inlined_call_operand.vmem [shape: f32[64,32], index: 0, kind: input, shape index: {}]   ;;  %s307_s2 = inlined_call_operand.vmem [shape: f32[64,16], index: 2, kind: output, shape index: {}]  }
   0x1   :  { %v22_v0 = vld [vmem:[%s305_s1 + $0x18] sm:$0xff]  ;;  %v21_v1 = vld [vmem:[%s305_s1 + $0x10] sm:$0xff]  ;;  %v20_v2 = vld [vmem:[%s305_s1 + $0x8] sm:$0xff] }
   0x2   :  { %186 = vmatprep.subr.mxu0 %v22_v0  ;;  %206 = vmatprep.subr.mxu1 %v22_v0  ;;  %v19_v3 = vld [vmem:[%s305_s1] sm:$0xff]  ;;  %v12_v6 = vld [vmem:[%s306_s0 + $0x8] sm:$0xff]  ;;  %v13_v8 = vld [vmem:[%s306_s0 + $0x10] sm:$0xff] }
   0x3   :  { %187 = vmatpush3.msra.mxu0 %v22_v0  ;;  %210 = vmatpush3.msra.mxu1 %v22_v0  ;;  %v11_v4 = vld [vmem:[%s306_s0] sm:$0xff]  ;;  %v16_v7 = vld [vmem:[%s306_s0 + $0x28] sm:$0xff]  ;;  %v17_v9 = vld [vmem:[%s306_s0 + $0x30] sm:$0xff] }
   0x4   :  { %188 = vmatprep.subr.mxu0 %v21_v1  ;;  %207 = vmatprep.subr.mxu1 %v21_v1  ;;  %v15_v5 = vld [vmem:[%s306_s0 + $0x20] sm:$0xff]  ;;  %v14_v10 = vld [vmem:[%s306_s0 + $0x18] sm:$0xff] }
   0x5   :  { %189 = vmatpush3.msra.mxu0 %v21_v1  ;;  %211 = vmatpush3.msra.mxu1 %v21_v1  ;;  %v18_v11 = vld [vmem:[%s306_s0 + $0x38] sm:$0xff] }
   0x6   :  { %190 = vmatprep.subr.mxu0 %v20_v2  ;;  %208 = vmatprep.subr.mxu1 %v20_v2 }
   0x7   :  { %191 = vmatpush3.msra.mxu0 %v20_v2  ;;  %212 = vmatpush3.msra.mxu1 %v20_v2 }
   0x8   :  { %192 = vmatprep.subr.mxu0 %v19_v3  ;;  %209 = vmatprep.subr.mxu1 %v19_v3 }
   0x9   :  { %193 = vmatpush3.msra.mxu0 %v19_v3  ;;  %213 = vmatpush3.msra.mxu1 %v19_v3 }
   0xa   :  { %194 = vmatprep.mubr.msk.f32.mxu0 %vm23_vm0, %v11_v4  ;;  %200 = vmatprep.mubr.msk.f32.mxu1 %vm23_vm0, %v15_v5 }
   0xb   :  { %195 = vmatmul.mubr.msk.f32.vlgmr.msra.gmra.mxu0 %vm23_vm0, %v12_v6  ;;  %201 = vmatmul.mubr.msk.f32.vlgmr.msra.gmra.mxu1 %vm23_vm0, %v16_v7 }
   0xc   :  { %197 = vmatprep.mubr.msk.f32.mxu0 %vm23_vm0, %v13_v8  ;;  %203 = vmatprep.mubr.msk.f32.mxu1 %vm23_vm0, %v17_v9 }
   0xf   :  { %198 = vmatmul.mubr.msk.f32.gmra.mxu0 %vm23_vm0, %v14_v10  ;;  %204 = vmatmul.mubr.msk.f32.gmra.mxu1 %vm23_vm0, %v18_v11 }
  0xcb   :  { %v196_v12 = vpop.f32.mrf.mxu0  ;;  %v202_v13 = vpop.f32.mrf.mxu1 }
  0xcc   :  { %155 = vst.msk [vmem:[%s307_s2 + $0x8] sm:$0xff] %vm153_vm1, %v196_v12  ;;  %159 = vst.msk [vmem:[%s307_s2 + $0x28] sm:$0xff] %vm153_vm1, %v202_v13 }
  0xcd   :  { %v114_v14 = vpop.f32.mrf.mxu0  ;;  %v134_v15 = vpop.f32.mrf.mxu1 }
  0xce   :  { %154 = vst.msk [vmem:[%s307_s2] sm:$0xff] %vm153_vm1, %v114_v14  ;;  %158 = vst.msk [vmem:[%s307_s2 + $0x20] sm:$0xff] %vm153_vm1, %v134_v15 }
  0xcf   :  { %v199_v16 = vpop.f32.mrf.mxu0  ;;  %v205_v17 = vpop.f32.mrf.mxu1 }
  0xd0   :  { %157 = vst.msk [vmem:[%s307_s2 + $0x18] sm:$0xff] %vm153_vm1, %v199_v16  ;;  %161 = vst.msk [vmem:[%s307_s2 + $0x38] sm:$0xff] %vm153_vm1, %v205_v17 }
  0xd1   :  { %v124_v18 = vpop.f32.mrf.mxu0  ;;  %v144_v19 = vpop.f32.mrf.mxu1 }
  0xd2   :  { %156 = vst.msk [vmem:[%s307_s2 + $0x10] sm:$0xff] %vm153_vm1, %v124_v18  ;;  %160 = vst.msk [vmem:[%s307_s2 + $0x30] sm:$0xff] %vm153_vm1, %v144_v19 }

</bundles_post_ra>
